<compile_context>
chip_gen: v7x
topology: tpu7x:2x2x1
jax: 0.10.0
libtpu: 0.0.40
codegen_flags: <defaults>
</compile_context>

<pallas_src>
import functools

import jax
import jax.numpy as jnp
from jax.experimental import pallas as pl
from jax.experimental.pallas import tpu as pltpu


def _round_up(x, m):
    return (x + m - 1) // m * m


# ---------------------------------------------------------------------------
# Pallas kernels
# ---------------------------------------------------------------------------
def _conv_pool_relu_stats_kernel(p_ref, w_ref, b_ref, r_ref, stat_ref, *, tm):
    # p_ref: (4, Kp, TM) bf16   -- axis 0 = 2x2 pool-window element
    # w_ref: (Cout, Kp) bf16     b_ref: (Cout, 1) f32
    # r_ref: (Cout, TM) bf16     stat_ref: (1, Cout, 2) f32  [sum | sumsq]
    # One MXU call for all four pool elements: concatenate along lanes
    # (tile-aligned: Kp % 8 == 0, TM % 128 == 0 -> pure vreg placement).
    pcat = jnp.concatenate(
        [p_ref[0], p_ref[1], p_ref[2], p_ref[3]], axis=1)        # (Kp, 4*TM)
    y = jnp.dot(w_ref[...], pcat, preferred_element_type=jnp.float32)
    # MaxPool2d(2): elementwise max over the four pool-window conv results
    # (128-aligned static lane slices; 3 VPU maxes on resident vregs).
    y = jnp.maximum(jnp.maximum(y[:, 0 * tm:1 * tm], y[:, 1 * tm:2 * tm]),
                    jnp.maximum(y[:, 2 * tm:3 * tm], y[:, 3 * tm:4 * tm]))
    r = jnp.maximum(y + b_ref[...], 0.0)                          # bias + ReLU
    r_ref[...] = r.astype(jnp.bfloat16)                           # bf16 writeback

    # BatchNorm partial statistics (f32 math on the already-resident vregs).
    # Padded M lanes contribute exactly relu(bias_c); corrected in the glue.
    stat_ref[0] = jnp.concatenate(
        [jnp.sum(r, axis=1, keepdims=True),
         jnp.sum(r * r, axis=1, keepdims=True)], axis=1)


def conv_pool_relu_stats(p, w, b, *, tm):
    """Fused conv(valid) -> maxpool(2) -> relu (+ per-channel sum/sumsq)."""
    _, kp, mp_pad = p.shape
    cout = w.shape[0]
    gt = mp_pad // tm
    kern = functools.partial(_conv_pool_relu_stats_kernel, tm=tm)
    return pl.pallas_call(
        kern,
        grid=(gt,),
        in_specs=[
            pl.BlockSpec((4, kp, tm), lambda i: (0, 0, i)),
            pl.BlockSpec((cout, kp), lambda i: (0, 0)),
            pl.BlockSpec((cout, 1), lambda i: (0, 0)),
        ],
        out_specs=[
            pl.BlockSpec((cout, tm), lambda i: (0, i)),
            pl.BlockSpec((1, cout, 2), lambda i: (i, 0, 0)),
        ],
        out_shape=[
            jax.ShapeDtypeStruct((cout, mp_pad), jnp.bfloat16),
            jax.ShapeDtypeStruct((gt, cout, 2), jnp.float32),
        ],
        compiler_params=pltpu.CompilerParams(
            dimension_semantics=("parallel",),
            vmem_limit_bytes=32 * 1024 * 1024),
    )(p, w, b)


def _matmul_bias_kernel(x_ref, w_ref, b_ref, o_ref):
    o_ref[...] = (jnp.dot(x_ref[...], w_ref[...],
                          preferred_element_type=jnp.float32) + b_ref[...])


def fc_matmul(x, w, b, *, tb):
    """(Bp, K) @ (K, Npad) + (1, Npad); Npad is a multiple of 128 (lane-dense)."""
    bp, K = x.shape
    _, N = w.shape
    return pl.pallas_call(
        _matmul_bias_kernel,
        grid=(bp // tb,),
        in_specs=[
            pl.BlockSpec((tb, K), lambda i: (i, 0)),
            pl.BlockSpec((K, N), lambda i: (0, 0)),
            pl.BlockSpec((1, N), lambda i: (0, 0)),
        ],
        out_specs=pl.BlockSpec((tb, N), lambda i: (i, 0)),
        out_shape=jax.ShapeDtypeStruct((bp, N), jnp.float32),
        compiler_params=pltpu.CompilerParams(
            dimension_semantics=("parallel",),
            vmem_limit_bytes=32 * 1024 * 1024),
    )(x, w, b)


# ---------------------------------------------------------------------------
# Glue (plain JAX): im2col with pool-window axis, BN fold, orchestration
# ---------------------------------------------------------------------------
def _build_pool_patches(x_cbhw, ksize):
    """x: (Cin, B, H, W) -> (4, Cin*k*k, B*Ho*Wo); axis 0 = 2x2 pool element."""
    cin, bsz, h, w = x_cbhw.shape
    hc, wc = h - ksize + 1, w - ksize + 1
    assert hc % 2 == 0 and wc % 2 == 0
    ho, wo = hc // 2, wc // 2
    sl = [x_cbhw[:, :, kh:kh + hc, kw:kw + wc]
          for kh in range(ksize) for kw in range(ksize)]
    p = jnp.stack(sl, axis=1)                              # (Cin, k*k, B, Hc, Wc)
    p = p.reshape(cin, ksize * ksize, bsz, ho, 2, wo, 2)
    p = p.transpose(4, 6, 0, 1, 2, 3, 5)                   # (dh, dw, Cin, k*k, B, Ho, Wo)
    return p.reshape(4, cin * ksize * ksize, bsz * ho * wo), (ho, wo)


def _stage(x_cbhw, conv_w, conv_b, gamma, beta, eps=1e-5):
    """One conv->pool->relu stage; returns r (Cout, B*Ho*Wo) bf16 + folded BN affine."""
    _, bsz, _, _ = x_cbhw.shape
    cout, _, k, _ = conv_w.shape
    # Build patches in bf16 (cast before pad) so XLA never holds an f32 copy.
    patches, (ho, wo) = _build_pool_patches(x_cbhw.astype(jnp.bfloat16), k)
    K = patches.shape[1]
    mp = bsz * ho * wo

    kp = _round_up(K, 8)                                   # sublane-align K
    # Lane-dense M tile: >=2 grid steps when possible (v7x dual-TC + pipeline
    # overlap), capped at 1024 so stage-2 tiles stay well inside the v7x
    # VMEM budget (patches double-buffered + lane-concat copy + f32 y).
    tm = max(128, min(1024, _round_up((mp + 1) // 2, 128)))
    mp_pad = _round_up(mp, tm)
    patches = jnp.pad(patches, ((0, 0), (0, kp - K), (0, mp_pad - mp)))
    wm = jnp.pad(conv_w.reshape(cout, K).astype(jnp.bfloat16),
                 ((0, 0), (0, kp - K)))
    bvec = conv_b.astype(jnp.float32)

    r, stats = conv_pool_relu_stats(patches, wm, bvec.reshape(cout, 1), tm=tm)
    r = r[:, :mp]                                          # (Cout, B*Ho*Wo) bf16

    # BatchNorm batch statistics (train mode, biased variance).  Each padded
    # M lane contributed exactly relu(bias_c) to sum and relu(bias_c)^2 to
    # sumsq -> subtract analytically (no per-tile mask in the kernel).
    n = float(mp)
    pad = float(mp_pad - mp)
    rb = jnp.maximum(bvec, 0.0)
    s = jnp.sum(stats[:, :, 0], axis=0) - pad * rb
    sq = jnp.sum(stats[:, :, 1], axis=0) - pad * rb * rb
    mean = s / n
    var = jnp.maximum(sq / n - mean * mean, 0.0)
    a = gamma * jax.lax.rsqrt(var + eps)                   # BN(r) == a*r + shift
    shift = beta - mean * a
    return r, a, shift, (ho, wo)


def cnn_forward(x_nchw, params):
    bsz = x_nchw.shape[0]
    eps = 1e-5
    x = jnp.transpose(x_nchw, (1, 0, 2, 3)).astype(jnp.float32)   # (Cin, B, H, W)

    # ---- stage 1: conv1 -> pool -> relu (+ BN1 stats) ----
    r1, a1, b1, (ho1, wo1) = _stage(x, params["conv1_w"], params["conv1_b"],
                                    params["bn1_gamma"], params["bn1_beta"], eps)

    # Fold BN1 (exact per-channel affine) into conv2 weights/bias (valid conv).
    w2 = params["conv2_w"]                                 # (32, 16, 5, 5)
    w2_eff = w2 * a1[None, :, None, None]
    b2_eff = params["conv2_b"] + jnp.einsum("oikl,i->o", w2, b1)

    # ---- stage 2: conv2' -> pool -> relu (+ BN2 stats) ----
    c1 = r1.shape[0]
    h1_cbhw = r1.reshape(c1, bsz, ho1, wo1)                # bf16, channel-major
    r2, a2, b2s, (ho2, wo2) = _stage(h1_cbhw, w2_eff, b2_eff,
                                     params["bn2_gamma"], params["bn2_beta"], eps)

    # ---- fold BN2 into fc (flatten order is NCHW, i.e. channel-major) ----
    c2 = r2.shape[0]
    s2 = ho2 * wo2
    a2_full = jnp.repeat(a2, s2)                           # (512,)
    b2_full = jnp.repeat(b2s, s2)
    fc_w, fc_b = params["fc_w"], params["fc_b"]
    w_fc_eff = fc_w * a2_full[None, :]
    b_fc_eff = fc_b + fc_w @ b2_full

    # flatten r2 (C2, B*S2) -> (B, C2*S2) in NCHW order (bf16 glue transpose)
    flat = r2.reshape(c2, bsz, s2).transpose(1, 0, 2).reshape(bsz, c2 * s2)

    # ---- fc: pad classes to 128 lanes, row-tiled grid (>=2 steps when B
    #      allows, so v7x can split), slice back ----
    num_classes = fc_w.shape[0]
    npad = _round_up(num_classes, 128)
    bp = _round_up(bsz, 8)
    tb = bp if bp < 16 else min(128, _round_up(bp // 2, 8))
    bp = _round_up(bp, tb)
    flat_p = jnp.pad(flat, ((0, bp - bsz), (0, 0)))        # stays bf16
    wk = jnp.pad(w_fc_eff.T, ((0, 0), (0, npad - num_classes))).astype(jnp.bfloat16)
    bk = jnp.pad(b_fc_eff, (0, npad - num_classes)).reshape(1, npad).astype(jnp.float32)
    logits = fc_matmul(flat_p, wk, bk, tb=tb)
    return logits[:bsz, :num_classes]


def init_params(key, num_classes):
    ks = jax.random.split(key, 6)
    p = {}
    p["conv1_w"] = jax.random.normal(ks[0], (16, 1, 5, 5), jnp.float32) * 0.1
    p["conv1_b"] = jax.random.normal(ks[1], (16,), jnp.float32) * 0.1
    p["conv2_w"] = jax.random.normal(ks[2], (32, 16, 5, 5), jnp.float32) * 0.05
    p["conv2_b"] = jax.random.normal(ks[3], (32,), jnp.float32) * 0.05
    p["bn1_gamma"] = jnp.ones((16,), jnp.float32)
    p["bn1_beta"] = jnp.zeros((16,), jnp.float32)
    p["bn2_gamma"] = jnp.ones((32,), jnp.float32)
    p["bn2_beta"] = jnp.zeros((32,), jnp.float32)
    p["fc_w"] = jax.random.normal(ks[4], (num_classes, 512), jnp.float32) * 0.02
    p["fc_b"] = jax.random.normal(ks[5], (num_classes,), jnp.float32) * 0.02
    return p


if __name__ == "__main__":
    num_classes = 10
    key = jax.random.PRNGKey(0)
    k_x, k_p = jax.random.split(key)

    # Input must be (B, 1, 28, 28) so the 512-wide fc lines up:
    # 28 -conv5-> 24 -pool-> 12 -conv5-> 8 -pool-> 4; 32*4*4 = 512.
    x = jax.random.normal(k_x, (2, 1, 28, 28), jnp.float32)
    params = init_params(k_p, num_classes)

    logits = jax.block_until_ready(jax.jit(cnn_forward)(x, params))
    assert logits.shape == (2, num_classes), logits.shape
    assert logits.dtype == jnp.float32
    assert bool(jnp.all(jnp.isfinite(logits)))
    print("KERNEL_OK")
</pallas_src>

<mosaic_0001>
module attributes {stable_mosaic.version = 11 : i64} {
  func.func @_conv_pool_relu_stats_kernel(%arg0: i32, %arg1: memref<4x32x256xbf16, #tpu.memory_space<vmem>>, %arg2: memref<16x32xbf16, #tpu.memory_space<vmem>>, %arg3: memref<16x1xf32, #tpu.memory_space<vmem>>, %arg4: memref<16x256xbf16, #tpu.memory_space<vmem>>, %arg5: memref<1x16x2xf32, #tpu.memory_space<vmem>>) attributes {dimension_semantics = [#tpu.dimension_semantics<parallel>], iteration_bounds = array<i64: 2>, scalar_prefetch = 0 : i64, scratch_operands = 0 : i64, tpu.core_type = #tpu.core_type<tc>, window_params = [{transform_indices = @transform_0, window_bounds = array<i64: 4, 32, 256>}, {pipeline_mode = #tpu.pipeline_mode<synchronous>, transform_indices = @transform_1, window_bounds = array<i64: 16, 32>}, {pipeline_mode = #tpu.pipeline_mode<synchronous>, transform_indices = @transform_2, window_bounds = array<i64: 16, 1>}, {transform_indices = @transform_3, window_bounds = array<i64: 16, 256>}, {transform_indices = @transform_4, window_bounds = array<i64: 1, 16, 2>}]} {
    %c0 = arith.constant 0 : index
    %c0_0 = arith.constant 0 : index
    %c0_1 = arith.constant 0 : index
    %0 = vector.load %arg1[%c0, %c0_0, %c0_1] : memref<4x32x256xbf16, #tpu.memory_space<vmem>>, vector<1x32x256xbf16>
    %1 = vector.shape_cast %0 : vector<1x32x256xbf16> to vector<32x256xbf16>
    %c1 = arith.constant 1 : index
    %c0_2 = arith.constant 0 : index
    %c0_3 = arith.constant 0 : index
    %2 = vector.load %arg1[%c1, %c0_2, %c0_3] : memref<4x32x256xbf16, #tpu.memory_space<vmem>>, vector<1x32x256xbf16>
    %3 = vector.shape_cast %2 : vector<1x32x256xbf16> to vector<32x256xbf16>
    %c2 = arith.constant 2 : index
    %c0_4 = arith.constant 0 : index
    %c0_5 = arith.constant 0 : index
    %4 = vector.load %arg1[%c2, %c0_4, %c0_5] : memref<4x32x256xbf16, #tpu.memory_space<vmem>>, vector<1x32x256xbf16>
    %5 = vector.shape_cast %4 : vector<1x32x256xbf16> to vector<32x256xbf16>
    %c3 = arith.constant 3 : index
    %c0_6 = arith.constant 0 : index
    %c0_7 = arith.constant 0 : index
    %6 = vector.load %arg1[%c3, %c0_6, %c0_7] : memref<4x32x256xbf16, #tpu.memory_space<vmem>>, vector<1x32x256xbf16>
    %7 = vector.shape_cast %6 : vector<1x32x256xbf16> to vector<32x256xbf16>
    %8 = tpu.concatenate %1, %3, %5, %7 in 1 : vector<32x256xbf16>, vector<32x256xbf16>, vector<32x256xbf16>, vector<32x256xbf16> -> vector<32x1024xbf16>
    %c0_8 = arith.constant 0 : index
    %c0_9 = arith.constant 0 : index
    %9 = vector.load %arg2[%c0_8, %c0_9] : memref<16x32xbf16, #tpu.memory_space<vmem>>, vector<16x32xbf16>
    %cst = arith.constant dense<0.000000e+00> : vector<16x1024xf32>
    %10 = tpu.matmul %9, %8, %cst {dimension_numbers = #tpu.dot_dimension_numbers<[1], [0], [0], [1], [0, 0, 1, 1], [], []>} : vector<16x32xbf16>, vector<32x1024xbf16>, vector<16x1024xf32> -> vector<16x1024xf32>
    %11 = vector.extract_strided_slice %10 {offsets = [0, 0], sizes = [16, 256], strides = [1, 1]} : vector<16x1024xf32> to vector<16x256xf32>
    %12 = vector.extract_strided_slice %10 {offsets = [0, 256], sizes = [16, 256], strides = [1, 1]} : vector<16x1024xf32> to vector<16x256xf32>
    %13 = arith.maximumf %11, %12 : vector<16x256xf32>
    %14 = vector.extract_strided_slice %10 {offsets = [0, 512], sizes = [16, 256], strides = [1, 1]} : vector<16x1024xf32> to vector<16x256xf32>
    %15 = vector.extract_strided_slice %10 {offsets = [0, 768], sizes = [16, 256], strides = [1, 1]} : vector<16x1024xf32> to vector<16x256xf32>
    %16 = arith.maximumf %14, %15 : vector<16x256xf32>
    %17 = arith.maximumf %13, %16 : vector<16x256xf32>
    %c0_10 = arith.constant 0 : index
    %c0_11 = arith.constant 0 : index
    %18 = vector.load %arg3[%c0_10, %c0_11] : memref<16x1xf32, #tpu.memory_space<vmem>>, vector<16x1xf32>
    %19 = vector.broadcast %18 : vector<16x1xf32> to vector<16x256xf32>
    %20 = arith.addf %17, %19 : vector<16x256xf32>
    %cst_12 = arith.constant 0.000000e+00 : f32
    %21 = vector.broadcast %cst_12 : f32 to vector<16x256xf32>
    %22 = arith.maximumf %20, %21 : vector<16x256xf32>
    %23 = arith.truncf %22 : vector<16x256xf32> to vector<16x256xbf16>
    %c0_13 = arith.constant 0 : index
    %c0_14 = arith.constant 0 : index
    %24 = vector.load %arg4[%c0_13, %c0_14] : memref<16x256xbf16, #tpu.memory_space<vmem>>, vector<16x256xbf16>
    tpu.vector_store %arg4[%c0_13, %c0_14], %23 {strides = array<i32>} : memref<16x256xbf16, #tpu.memory_space<vmem>>, vector<16x256xbf16>,
    %cst_15 = arith.constant dense<0.000000e+00> : vector<16xf32>
    %25 = vector.multi_reduction <add>, %22, %cst_15 [1] : vector<16x256xf32> to vector<16xf32>
    %26 = vector.shape_cast %25 : vector<16xf32> to vector<16x1xf32>
    %27 = arith.mulf %22, %22 : vector<16x256xf32>
    %cst_16 = arith.constant dense<0.000000e+00> : vector<16xf32>
    %28 = vector.multi_reduction <add>, %27, %cst_16 [1] : vector<16x256xf32> to vector<16xf32>
    %29 = vector.shape_cast %28 : vector<16xf32> to vector<16x1xf32>
    %30 = tpu.concatenate %26, %29 in 1 : vector<16x1xf32>, vector<16x1xf32> -> vector<16x2xf32>
    %c0_17 = arith.constant 0 : index
    %c0_18 = arith.constant 0 : index
    %c0_19 = arith.constant 0 : index
    %31 = vector.load %arg5[%c0_17, %c0_18, %c0_19] : memref<1x16x2xf32, #tpu.memory_space<vmem>>, vector<1x16x2xf32>
    %32 = vector.shape_cast %31 : vector<1x16x2xf32> to vector<16x2xf32>
    %33 = vector.shape_cast %30 : vector<16x2xf32> to vector<1x16x2xf32>
    tpu.vector_store %arg5[%c0_17, %c0_18, %c0_19], %33 {strides = array<i32>} : memref<1x16x2xf32, #tpu.memory_space<vmem>>, vector<1x16x2xf32>,
    return
  }
  func.func @transform_0(%arg0: i32) -> (i32, i32, i32) {
    %c0_i32 = arith.constant 0 : i32
    %c0_i32_0 = arith.constant 0 : i32
    %c0_i32_1 = arith.constant 0 : i32
    return %c0_i32, %c0_i32_0, %arg0 : i32, i32, i32
  }
  func.func @transform_1(%arg0: i32) -> (i32, i32) {
    %c0_i32 = arith.constant 0 : i32
    %c0_i32_0 = arith.constant 0 : i32
    %c0_i32_1 = arith.constant 0 : i32
    return %c0_i32, %c0_i32_0 : i32, i32
  }
  func.func @transform_2(%arg0: i32) -> (i32, i32) {
    %c0_i32 = arith.constant 0 : i32
    %c0_i32_0 = arith.constant 0 : i32
    %c0_i32_1 = arith.constant 0 : i32
    return %c0_i32, %c0_i32_0 : i32, i32
  }
  func.func @transform_3(%arg0: i32) -> (i32, i32) {
    %c0_i32 = arith.constant 0 : i32
    %c0_i32_0 = arith.constant 0 : i32
    return %c0_i32, %arg0 : i32, i32
  }
  func.func @transform_4(%arg0: i32) -> (i32, i32, i32) {
    %c0_i32 = arith.constant 0 : i32
    %c0_i32_0 = arith.constant 0 : i32
    %c0_i32_1 = arith.constant 0 : i32
    return %arg0, %c0_i32, %c0_i32_0 : i32, i32, i32
  }
}

module attributes {stable_mosaic.version = 11 : i64} {
  func.func @_conv_pool_relu_stats_kernel(%arg0: i32, %arg1: memref<4x400x128xbf16, #tpu.memory_space<vmem>>, %arg2: memref<32x400xbf16, #tpu.memory_space<vmem>>, %arg3: memref<32x1xf32, #tpu.memory_space<vmem>>, %arg4: memref<32x128xbf16, #tpu.memory_space<vmem>>, %arg5: memref<1x32x2xf32, #tpu.memory_space<vmem>>) attributes {dimension_semantics = [#tpu.dimension_semantics<parallel>], iteration_bounds = array<i64: 1>, scalar_prefetch = 0 : i64, scratch_operands = 0 : i64, tpu.core_type = #tpu.core_type<tc>, window_params = [{transform_indices = @transform_0, window_bounds = array<i64: 4, 400, 128>}, {pipeline_mode = #tpu.pipeline_mode<synchronous>, transform_indices = @transform_1, window_bounds = array<i64: 32, 400>}, {pipeline_mode = #tpu.pipeline_mode<synchronous>, transform_indices = @transform_2, window_bounds = array<i64: 32, 1>}, {transform_indices = @transform_3, window_bounds = array<i64: 32, 128>}, {transform_indices = @transform_4, window_bounds = array<i64: 1, 32, 2>}]} {
    %c0 = arith.constant 0 : index
    %c0_0 = arith.constant 0 : index
    %c0_1 = arith.constant 0 : index
    %0 = vector.load %arg1[%c0, %c0_0, %c0_1] : memref<4x400x128xbf16, #tpu.memory_space<vmem>>, vector<1x400x128xbf16>
    %1 = vector.shape_cast %0 : vector<1x400x128xbf16> to vector<400x128xbf16>
    %c1 = arith.constant 1 : index
    %c0_2 = arith.constant 0 : index
    %c0_3 = arith.constant 0 : index
    %2 = vector.load %arg1[%c1, %c0_2, %c0_3] : memref<4x400x128xbf16, #tpu.memory_space<vmem>>, vector<1x400x128xbf16>
    %3 = vector.shape_cast %2 : vector<1x400x128xbf16> to vector<400x128xbf16>
    %c2 = arith.constant 2 : index
    %c0_4 = arith.constant 0 : index
    %c0_5 = arith.constant 0 : index
    %4 = vector.load %arg1[%c2, %c0_4, %c0_5] : memref<4x400x128xbf16, #tpu.memory_space<vmem>>, vector<1x400x128xbf16>
    %5 = vector.shape_cast %4 : vector<1x400x128xbf16> to vector<400x128xbf16>
    %c3 = arith.constant 3 : index
    %c0_6 = arith.constant 0 : index
    %c0_7 = arith.constant 0 : index
    %6 = vector.load %arg1[%c3, %c0_6, %c0_7] : memref<4x400x128xbf16, #tpu.memory_space<vmem>>, vector<1x400x128xbf16>
    %7 = vector.shape_cast %6 : vector<1x400x128xbf16> to vector<400x128xbf16>
    %8 = tpu.concatenate %1, %3, %5, %7 in 1 : vector<400x128xbf16>, vector<400x128xbf16>, vector<400x128xbf16>, vector<400x128xbf16> -> vector<400x512xbf16>
    %c0_8 = arith.constant 0 : index
    %c0_9 = arith.constant 0 : index
    %9 = vector.load %arg2[%c0_8, %c0_9] : memref<32x400xbf16, #tpu.memory_space<vmem>>, vector<32x400xbf16>
    %cst = arith.constant dense<0.000000e+00> : vector<32x512xf32>
    %10 = tpu.matmul %9, %8, %cst {dimension_numbers = #tpu.dot_dimension_numbers<[1], [0], [0], [1], [0, 0, 1, 1], [], []>} : vector<32x400xbf16>, vector<400x512xbf16>, vector<32x512xf32> -> vector<32x512xf32>
    %11 = vector.extract_strided_slice %10 {offsets = [0, 0], sizes = [32, 128], strides = [1, 1]} : vector<32x512xf32> to vector<32x128xf32>
    %12 = vector.extract_strided_slice %10 {offsets = [0, 128], sizes = [32, 128], strides = [1, 1]} : vector<32x512xf32> to vector<32x128xf32>
    %13 = arith.maximumf %11, %12 : vector<32x128xf32>
    %14 = vector.extract_strided_slice %10 {offsets = [0, 256], sizes = [32, 128], strides = [1, 1]} : vector<32x512xf32> to vector<32x128xf32>
    %15 = vector.extract_strided_slice %10 {offsets = [0, 384], sizes = [32, 128], strides = [1, 1]} : vector<32x512xf32> to vector<32x128xf32>
    %16 = arith.maximumf %14, %15 : vector<32x128xf32>
    %17 = arith.maximumf %13, %16 : vector<32x128xf32>
    %c0_10 = arith.constant 0 : index
    %c0_11 = arith.constant 0 : index
    %18 = vector.load %arg3[%c0_10, %c0_11] : memref<32x1xf32, #tpu.memory_space<vmem>>, vector<32x1xf32>
    %19 = vector.broadcast %18 : vector<32x1xf32> to vector<32x128xf32>
    %20 = arith.addf %17, %19 : vector<32x128xf32>
    %cst_12 = arith.constant 0.000000e+00 : f32
    %21 = vector.broadcast %cst_12 : f32 to vector<32x128xf32>
    %22 = arith.maximumf %20, %21 : vector<32x128xf32>
    %23 = arith.truncf %22 : vector<32x128xf32> to vector<32x128xbf16>
    %c0_13 = arith.constant 0 : index
    %c0_14 = arith.constant 0 : index
    %24 = vector.load %arg4[%c0_13, %c0_14] : memref<32x128xbf16, #tpu.memory_space<vmem>>, vector<32x128xbf16>
    tpu.vector_store %arg4[%c0_13, %c0_14], %23 {strides = array<i32>} : memref<32x128xbf16, #tpu.memory_space<vmem>>, vector<32x128xbf16>,
    %cst_15 = arith.constant dense<0.000000e+00> : vector<32xf32>
    %25 = vector.multi_reduction <add>, %22, %cst_15 [1] : vector<32x128xf32> to vector<32xf32>
    %26 = vector.shape_cast %25 : vector<32xf32> to vector<32x1xf32>
    %27 = arith.mulf %22, %22 : vector<32x128xf32>
    %cst_16 = arith.constant dense<0.000000e+00> : vector<32xf32>
    %28 = vector.multi_reduction <add>, %27, %cst_16 [1] : vector<32x128xf32> to vector<32xf32>
    %29 = vector.shape_cast %28 : vector<32xf32> to vector<32x1xf32>
    %30 = tpu.concatenate %26, %29 in 1 : vector<32x1xf32>, vector<32x1xf32> -> vector<32x2xf32>
    %c0_17 = arith.constant 0 : index
    %c0_18 = arith.constant 0 : index
    %c0_19 = arith.constant 0 : index
    %31 = vector.load %arg5[%c0_17, %c0_18, %c0_19] : memref<1x32x2xf32, #tpu.memory_space<vmem>>, vector<1x32x2xf32>
    %32 = vector.shape_cast %31 : vector<1x32x2xf32> to vector<32x2xf32>
    %33 = vector.shape_cast %30 : vector<32x2xf32> to vector<1x32x2xf32>
    tpu.vector_store %arg5[%c0_17, %c0_18, %c0_19], %33 {strides = array<i32>} : memref<1x32x2xf32, #tpu.memory_space<vmem>>, vector<1x32x2xf32>,
    return
  }
  func.func @transform_0(%arg0: i32) -> (i32, i32, i32) {
    %c0_i32 = arith.constant 0 : i32
    %c0_i32_0 = arith.constant 0 : i32
    %c0_i32_1 = arith.constant 0 : i32
    return %c0_i32, %c0_i32_0, %arg0 : i32, i32, i32
  }
  func.func @transform_1(%arg0: i32) -> (i32, i32) {
    %c0_i32 = arith.constant 0 : i32
    %c0_i32_0 = arith.constant 0 : i32
    %c0_i32_1 = arith.constant 0 : i32
    return %c0_i32, %c0_i32_0 : i32, i32
  }
  func.func @transform_2(%arg0: i32) -> (i32, i32) {
    %c0_i32 = arith.constant 0 : i32
    %c0_i32_0 = arith.constant 0 : i32
    %c0_i32_1 = arith.constant 0 : i32
    return %c0_i32, %c0_i32_0 : i32, i32
  }
  func.func @transform_3(%arg0: i32) -> (i32, i32) {
    %c0_i32 = arith.constant 0 : i32
    %c0_i32_0 = arith.constant 0 : i32
    return %c0_i32, %arg0 : i32, i32
  }
  func.func @transform_4(%arg0: i32) -> (i32, i32, i32) {
    %c0_i32 = arith.constant 0 : i32
    %c0_i32_0 = arith.constant 0 : i32
    %c0_i32_1 = arith.constant 0 : i32
    return %arg0, %c0_i32, %c0_i32_0 : i32, i32, i32
  }
}

module attributes {stable_mosaic.version = 11 : i64} {
  func.func @_matmul_bias_kernel(%arg0: i32, %arg1: memref<8x512xbf16, #tpu.memory_space<vmem>>, %arg2: memref<512x128xbf16, #tpu.memory_space<vmem>>, %arg3: memref<1x128xf32, #tpu.memory_space<vmem>>, %arg4: memref<8x128xf32, #tpu.memory_space<vmem>>) attributes {dimension_semantics = [#tpu.dimension_semantics<parallel>], iteration_bounds = array<i64: 1>, scalar_prefetch = 0 : i64, scratch_operands = 0 : i64, tpu.core_type = #tpu.core_type<tc>, window_params = [{transform_indices = @transform_0, window_bounds = array<i64: 8, 512>}, {pipeline_mode = #tpu.pipeline_mode<synchronous>, transform_indices = @transform_1, window_bounds = array<i64: 512, 128>}, {pipeline_mode = #tpu.pipeline_mode<synchronous>, transform_indices = @transform_2, window_bounds = array<i64: 1, 128>}, {transform_indices = @transform_3, window_bounds = array<i64: 8, 128>}]} {
    %c0 = arith.constant 0 : index
    %c0_0 = arith.constant 0 : index
    %0 = vector.load %arg1[%c0, %c0_0] : memref<8x512xbf16, #tpu.memory_space<vmem>>, vector<8x512xbf16>
    %c0_1 = arith.constant 0 : index
    %c0_2 = arith.constant 0 : index
    %1 = vector.load %arg2[%c0_1, %c0_2] : memref<512x128xbf16, #tpu.memory_space<vmem>>, vector<512x128xbf16>
    %cst = arith.constant dense<0.000000e+00> : vector<8x128xf32>
    %2 = tpu.matmul %0, %1, %cst {dimension_numbers = #tpu.dot_dimension_numbers<[1], [0], [0], [1], [0, 0, 1, 1], [], []>} : vector<8x512xbf16>, vector<512x128xbf16>, vector<8x128xf32> -> vector<8x128xf32>
    %c0_3 = arith.constant 0 : index
    %c0_4 = arith.constant 0 : index
    %3 = vector.load %arg3[%c0_3, %c0_4] : memref<1x128xf32, #tpu.memory_space<vmem>>, vector<1x128xf32>
    %4 = vector.broadcast %3 : vector<1x128xf32> to vector<8x128xf32>
    %5 = arith.addf %2, %4 : vector<8x128xf32>
    %c0_5 = arith.constant 0 : index
    %c0_6 = arith.constant 0 : index
    %6 = vector.load %arg4[%c0_5, %c0_6] : memref<8x128xf32, #tpu.memory_space<vmem>>, vector<8x128xf32>
    tpu.vector_store %arg4[%c0_5, %c0_6], %5 {strides = array<i32>} : memref<8x128xf32, #tpu.memory_space<vmem>>, vector<8x128xf32>,
    return
  }
  func.func @transform_0(%arg0: i32) -> (i32, i32) {
    %c0_i32 = arith.constant 0 : i32
    %c0_i32_0 = arith.constant 0 : i32
    return %arg0, %c0_i32 : i32, i32
  }
  func.func @transform_1(%arg0: i32) -> (i32, i32) {
    %c0_i32 = arith.constant 0 : i32
    %c0_i32_0 = arith.constant 0 : i32
    %c0_i32_1 = arith.constant 0 : i32
    return %c0_i32, %c0_i32_0 : i32, i32
  }
  func.func @transform_2(%arg0: i32) -> (i32, i32) {
    %c0_i32 = arith.constant 0 : i32
    %c0_i32_0 = arith.constant 0 : i32
    %c0_i32_1 = arith.constant 0 : i32
    return %c0_i32, %c0_i32_0 : i32, i32
  }
  func.func @transform_3(%arg0: i32) -> (i32, i32) {
    %c0_i32 = arith.constant 0 : i32
    %c0_i32_0 = arith.constant 0 : i32
    return %arg0, %c0_i32 : i32, i32
  }
}

</mosaic_0001>

<bundles_post_ra>
// kernel: cnn_forward.3
= control target key start
LH: loop header
LB: loop body
LE: loop exit
PB: predicated region body
PF: predicated region fallthrough
CT: control target
= control target key end

     0   :  { %s946_s15 = smov 0   ;;  %s948_s16 = smov 0   ;;  %s1064_s0 = inlined_call_operand.vmem [shape: bf16[4,32,512], index: 0, kind: input, shape index: {}]   ;;  %s1065_s1 = inlined_call_operand.vmem [shape: bf16[16,32], index: 1, kind: input, shape index: {}]   ;;  %s1066_s2 = inlined_call_operand.vmem [shape: f32[16,1], index: 2, kind: input, shape index: {}]   ;;  %s1067_s3 = inlined_call_operand.vmem [shape: bf16[16,512], index: 3, kind: output, shape index: {0}]   ;;  %s1068_s4 = inlined_call_operand.vmem [shape: f32[2,16,2], index: 4, kind: output, shape index: {1}]  }
   0x1   :  { %s950_s17 = smov 0  }
   0x2 LB: > { %s962_s18 = sadd.s32 4294967295, %s918_s17   ;;  %s965_s19 = sadd.s32 1, %s918_s17   ;;  %s918_s17 = sphi %s950_s17, %s1072_s17   ;;  %s914_s16 = sphi %s948_s16, %s1071_s16   ;;  %s910_s15 = sphi %s946_s15, %s1070_s15  }
   0x3   : > { %s19_s20 = ssub.s32 %s918_s17, %s965_s19  ;;  %s22_s21 = sadd.s32 1, %s914_s16 }
   0x4   : > { %p20_p0 = scmp.eq.s32.totalorder %s19_s20, 0  ;;  %p29_p1 = scmp.ne.s32.totalorder %s914_s16, %s910_s15 }
   0x5   : > { %p30_p2 = scmp.eq.s32.totalorder %s918_s17, 0  ;;  %p101_p3 = scmp.eq.s32.totalorder %s962_s18, 1 }
   0x6   : > { %s975_s22 = scalar_select %p20_p0, %s914_s16, %s22_s21  }
   0x7   : > { %p31_p4 = por %p30_p2, %p29_p1  ;;  %p977_p5 = por %p101_p3, %p29_p1 }
   0x8   : > { %p791_p6 = scmp.ge.s32.totalorder %s918_s17, 2 }
   0xa   : > { %155 = sbr.rel (%p791_p6) target bundleno = 29 (0x1d), region = 24 }
  0x11   : > { %158 = sbr.rel (!%p31_p4) target bundleno = 29 (0x1d), region = 28  ;;  %s160_s24 = sand.u32 (%p31_p4), 1, %s914_s16  }
  0x12   : > { %s840_s25 = sshll.u32 (%p31_p4), %s918_s17, 3  ;;  %s792_s26 = sshll.u32 (%p31_p4), %s160_s24, 7 }
  0x13   : > { %s987_s29 = scalar_lea.vmem (%p31_p4), %s1064_s0, %s840_s25  ;;  %s162_s30 = scalar_lea.vmem (%p31_p4), [#allocation2], %s792_s26 }
  0x14   : > { %v223_v0 = vld [vmem:[%s987_s29] sm:$0xff] (%p31_p4)  ;;  %v225_v1 = vld [vmem:[%s987_s29 + $0x10] sm:$0xff] (%p31_p4) }
  0x15   : > { %v227_v2 = vld [vmem:[%s987_s29 + $0x20] sm:$0xff] (%p31_p4)  ;;  %224 = vst [vmem:[%s162_s30] sm:$0xff] (%p31_p4), %v223_v0  ;;  %226 = vst [vmem:[%s162_s30 + $0x8] sm:$0xff] (%p31_p4), %v225_v1  ;;  %v229_v3 = vld [vmem:[%s987_s29 + $0x30] sm:$0xff] (%p31_p4) }
  0x16   : > { %228 = vst [vmem:[%s162_s30 + $0x10] sm:$0xff] (%p31_p4), %v227_v2  ;;  %v231_v4 = vld [vmem:[%s987_s29 + $0x40] sm:$0xff] (%p31_p4)  ;;  %v233_v5 = vld [vmem:[%s987_s29 + $0x50] sm:$0xff] (%p31_p4)  ;;  %230 = vst [vmem:[%s162_s30 + $0x18] sm:$0xff] (%p31_p4), %v229_v3 }
  0x17   : > { %232 = vst [vmem:[%s162_s30 + $0x20] sm:$0xff] (%p31_p4), %v231_v4  ;;  %234 = vst [vmem:[%s162_s30 + $0x28] sm:$0xff] (%p31_p4), %v233_v5  ;;  %v235_v6 = vld [vmem:[%s987_s29 + $0x60] sm:$0xff] (%p31_p4)  ;;  %v237_v7 = vld [vmem:[%s987_s29 + $0x70] sm:$0xff] (%p31_p4) }
  0x18   : > { %v239_v8 = vld [vmem:[%s987_s29 + $0x80] sm:$0xff]  ;;  %236 = vst [vmem:[%s162_s30 + $0x30] sm:$0xff] %v235_v6  ;;  %238 = vst [vmem:[%s162_s30 + $0x38] sm:$0xff] %v237_v7  ;;  %v241_v9 = vld [vmem:[%s987_s29 + $0x90] sm:$0xff] }
  0x19   : > { %240 = vst [vmem:[%s162_s30 + $0x40] sm:$0xff] %v239_v8  ;;  %v243_v10 = vld [vmem:[%s987_s29 + $0xa0] sm:$0xff]  ;;  %v245_v11 = vld [vmem:[%s987_s29 + $0xb0] sm:$0xff]  ;;  %242 = vst [vmem:[%s162_s30 + $0x48] sm:$0xff] %v241_v9 }
  0x1a   : > { %244 = vst [vmem:[%s162_s30 + $0x50] sm:$0xff] %v243_v10  ;;  %246 = vst [vmem:[%s162_s30 + $0x58] sm:$0xff] %v245_v11  ;;  %v247_v12 = vld [vmem:[%s987_s29 + $0xc0] sm:$0xff]  ;;  %v249_v13 = vld [vmem:[%s987_s29 + $0xd0] sm:$0xff] }
  0x1b   : > { %v251_v14 = vld [vmem:[%s987_s29 + $0xe0] sm:$0xff]  ;;  %248 = vst [vmem:[%s162_s30 + $0x60] sm:$0xff] %v247_v12  ;;  %250 = vst [vmem:[%s162_s30 + $0x68] sm:$0xff] %v249_v13  ;;  %v253_v15 = vld [vmem:[%s987_s29 + $0xf0] sm:$0xff] }
  0x1c   : > { %252 = vst [vmem:[%s162_s30 + $0x70] sm:$0xff] %v251_v14  ;;  %254 = vst [vmem:[%s162_s30 + $0x78] sm:$0xff] %v253_v15 }
  0x1d PF: > { %p795_p7 = scmp.ge.s32.totalorder %s918_s17, 1  ;;  %p259_p8 = scmp.lt.s32.totalorder %s918_s17, 3 }
  0x1f   : > { %p260_p9 = pnand %p795_p7, %p259_p8 }
  0x20   : > { %s266_s5 = sand.u32 (!%p260_p9), 1, %s910_s15   ;;  %v920_v16 = vmov (!%p260_p9), 0   ;;  %v597_v17 = vld [vmem:[%s1066_s2] sm:$0xff] (!%p260_p9)  ;;  %v598_v19 = vld [vmem:[%s1066_s2 + $0x8] sm:$0xff] (!%p260_p9)  ;;  %vm409_vm0 = vcmask (!%p260_p9), 261120   ;;  %p297_p10 = scmp.lt.s32.totalorder (!%p260_p9), %s962_s18, 1 }
  0x21   : > { %263 = sbr.rel (%p260_p9) target bundleno = 428 (0x1ac), region = 66  ;;  %s796_s6 = sshll.u32 (!%p260_p9), %s266_s5, 7  ;;  %445 = vmatprep.mubr.bf16.mxu0 (!%p260_p9), %v920_v16  ;;  %488 = vmatprep.mubr.bf16.mxu1 (!%p260_p9), %v920_v16  ;;  %v883_v27 = vld [vmem:[%s1065_s1] sm:$0xff] (!%p260_p9)   ;;  %vm647_vm1 = vcmask (!%p260_p9), 7168   ;;  %vm650_vm2 = vcmask (!%p260_p9), 15360  }
  0x22   : > { %870 = vset.pattern.permute.xlu0 (!%p260_p9), %v920_v16  ;;  %s1013_s9 = scalar_lea.vmem (!%p260_p9), [#allocation2], %s796_s6  ;;  %s797_s14 = sshll.u32 (!%p260_p9), %s266_s5, 4 }
  0x23   : > { %v871_v18 = vld [vmem:[%s1013_s9 + $0x4] ss:$8 sps:$4 sm:$0xff] (!%p260_p9)   ;;  %601 = vperm.xlu0 (!%p260_p9), %870, %v597_v17   ;;  %v875_v21 = vld [vmem:[%s1013_s9] ss:$8 sps:$4 sm:$0xff] (!%p260_p9)   ;;  %v877_v23 = vld [vmem:[%s1013_s9 + $0x14] ss:$8 sps:$4 sm:$0xff] (!%p260_p9)  }
  0x24   : > { %v873_v20 = vld [vmem:[%s1013_s9 + $0x24] ss:$8 sps:$4 sm:$0xff] (!%p260_p9)   ;;  %413 = vmatprep.subr.bf16.mxu0 (!%p260_p9), %v871_v18  ;;  %v876_v22 = vld [vmem:[%s1013_s9 + $0x20] ss:$8 sps:$4 sm:$0xff] (!%p260_p9)   ;;  %v879_v24 = vld [vmem:[%s1013_s9 + $0x34] ss:$8 sps:$4 sm:$0xff] (!%p260_p9)  }
  0x25   : > { %456 = vmatprep.subr.bf16.mxu1 (!%p260_p9), %v873_v20  ;;  %414 = vmatpush1.bf16.msra.mxu0 (!%p260_p9), %v875_v21  ;;  %v881_v25 = vld [vmem:[%s1013_s9 + $0x10] ss:$8 sps:$4 sm:$0xff] (!%p260_p9)   ;;  %v886_v28 = vld [vmem:[%s1013_s9 + $0x44] ss:$8 sps:$4 sm:$0xff] (!%p260_p9)   ;;  %v884_v29 = vld [vmem:[%s1013_s9 + $0x40] ss:$8 sps:$4 sm:$0xff] (!%p260_p9)  }
  0x26   : > { %457 = vmatpush1.bf16.msra.mxu1 (!%p260_p9), %v876_v22  ;;  %415 = vmatprep.subr.bf16.mxu0 (!%p260_p9), %v877_v23  ;;  %v882_v26 = vld [vmem:[%s1013_s9 + $0x30] ss:$8 sps:$4 sm:$0xff] (!%p260_p9)   ;;  %v889_v30 = vld [vmem:[%s1013_s9 + $0x64] ss:$8 sps:$4 sm:$0xff] (!%p260_p9)   ;;  %v887_v31 = vld [vmem:[%s1013_s9 + $0x60] ss:$8 sps:$4 sm:$0xff] (!%p260_p9)  }
  0x27   : > { %606 = vperm.xlu0 (!%p260_p9), %870, %v598_v19   ;;  %458 = vmatprep.subr.bf16.mxu1 (!%p260_p9), %v879_v24  ;;  %v892_v32 = vld [vmem:[%s1013_s9 + $0x54] ss:$8 sps:$4 sm:$0xff] (!%p260_p9)   ;;  %v890_v34 = vld [vmem:[%s1013_s9 + $0x50] ss:$8 sps:$4 sm:$0xff] (!%p260_p9)   ;;  %s287_s17 = scalar_lea.vmem (!%p260_p9), [#allocation3], %s797_s14 }
  0x28   : > { %v895_v33 = vld [vmem:[%s1013_s9 + $0x74] ss:$8 sps:$4 sm:$0xff]   ;;  %v893_v35 = vld [vmem:[%s1013_s9 + $0x70] ss:$8 sps:$4 sm:$0xff]   ;;  %s298_s15 = scalar_select %p297_p10, %s962_s18, 1 }
  0x29   : > { %416 = vmatpush1.bf16.msra.mxu0 %v881_v25  ;;  %s844_s26 = sshll.u32 (%p977_p5), %s962_s18, 3 }
  0x2a   : > { %459 = vmatpush1.bf16.msra.mxu1 %v882_v26  ;;  %499 = vmatprep.subr.bf16.mxu0 %v886_v28  ;;  %s841_s20 = sshll.u32 %s298_s15, 4  ;;  %s667_s29 = scalar_lea.vmem (%p977_p5), %s1067_s3, %s844_s26 }
  0x2b   : > { %542 = vmatprep.subr.bf16.mxu1 %v889_v30  ;;  %s301_s25 = scalar_lea.vmem %s1068_s4, %s841_s20 }
  0x2c   : > { %829 = vmatmul.mubr.msk.bf16.vlgmr.msra.gmra.mrb[0].mxu0 %vm409_vm0, %v883_v27 }
  0x2d   : > { %830 = vmatmul.mubr.msk.bf16.vlgmr.msra.gmra.mrb[0].mxu1 %vm409_vm0, %v883_v27  ;;  %500 = vmatpush1.bf16.msra.mxu0 %v884_v29 }
  0x2e   : > { %543 = vmatpush1.bf16.msra.mxu1 %v887_v31  ;;  %501 = vmatprep.subr.bf16.mxu0 %v892_v32 }
  0x2f   : > { %544 = vmatprep.subr.bf16.mxu1 %v895_v33  ;;  %531 = vmatprep.mubr.bf16.mxu0 %v920_v16 }
  0x30   : > { %574 = vmatprep.mubr.bf16.mxu1 %v920_v16 }
  0x31   : > { %502 = vmatpush1.bf16.msra.mxu0 %v890_v34 }
  0x32   : > { %545 = vmatpush1.bf16.msra.mxu1 %v893_v35 }
  0x34   : > { %831 = vmatmul.mubr.msk.bf16.vlgmr.msra.gmra.mrb[4].mxu0 %vm409_vm0, %v883_v27 }
  0x35   : > { %832 = vmatmul.mubr.msk.bf16.vlgmr.msra.gmra.mrb[4].mxu1 %vm409_vm0, %v883_v27 }
  0xa2   : > { %v602_v48 = vpop.permute.xlu0 %601 }
  0xa6   : > { %v607_v63 = vpop.permute.xlu0 %606 }
  0xff   : > { %v447_v36 = vpop.f32.mrb[0].mxu0 }
 0x100   : > { %v490_v37 = vpop.f32.mrb[0].mxu1  ;;  %v449_v39 = vpop.f32.mrb[1].mxu0 }
 0x101   : > { %v585_v38 = vmax.f32 %v447_v36, %v490_v37  ;;  %v492_v40 = vpop.f32.mrb[1].mxu1  ;;  %v451_v42 = vpop.f32.mrb[2].mxu0 }
 0x102   : > { %v586_v41 = vmax.f32 %v449_v39, %v492_v40  ;;  %v494_v43 = vpop.f32.mrb[2].mxu1  ;;  %v453_v45 = vpop.f32.mrb[3].mxu0 }
 0x103   : > { %v587_v44 = vmax.f32 %v451_v42, %v494_v43  ;;  %v496_v46 = vpop.f32.mrb[3].mxu1 }
 0x104   : > { %v588_v47 = vmax.f32 %v453_v45, %v496_v46 }
 0x107   : > { %v533_v49 = vpop.f32.mrb[4].mxu0 }
 0x108   : > { %v576_v50 = vpop.f32.mrb[4].mxu1  ;;  %v535_v52 = vpop.f32.mrb[5].mxu0 }
 0x109   : > { %v589_v51 = vmax.f32 %v533_v49, %v576_v50  ;;  %v578_v53 = vpop.f32.mrb[5].mxu1  ;;  %v537_v55 = vpop.f32.mrb[6].mxu0 }
 0x10a   : > { %v590_v54 = vmax.f32 %v535_v52, %v578_v53  ;;  %v580_v56 = vpop.f32.mrb[6].mxu1  ;;  %v539_v59 = vpop.f32.mrb[7].mxu0 }
 0x10b   : > { %v593_v57 = vmax.f32 %v585_v38, %v589_v51  ;;  %v591_v58 = vmax.f32 %v537_v55, %v580_v56  ;;  %v582_v60 = vpop.f32.mrb[7].mxu1 }
 0x10c   : > { %v594_v61 = vmax.f32 %v586_v41, %v590_v54  ;;  %v592_v62 = vmax.f32 %v539_v59, %v582_v60 }
 0x10d   : > { %v609_v0 = vadd.f32 %v602_v48, %v593_v57  ;;  %v595_v1 = vmax.f32 %v587_v44, %v591_v58 }
 0x10e   : > { %v610_v2 = vadd.f32 %v602_v48, %v594_v61  ;;  %v596_v3 = vmax.f32 %v588_v47, %v592_v62 }
 0x10f   : > { %v613_v4 = vmax.f32 %v609_v0, 0.0  ;;  %v611_v5 = vadd.f32 %v607_v63, %v595_v1 }
 0x110   : > { %v614_v6 = vmax.f32 %v610_v2, 0.0  ;;  %v612_v7 = vadd.f32 %v607_v63, %v596_v3 }
 0x111   : > { %v615_v8 = vmax.f32 %v611_v5, 0.0  ;;  %v637_v9 = vmul.f32 %v613_v4, %v613_v4 }
 0x112   : > { %v842_v10 = vpack.c.bf16 %v614_v6, %v613_v4  ;;  %v616_v11 = vmax.f32 %v612_v7, 0.0  ;;  %v631_v12 = vadd.f32 %v614_v6, %v613_v4  ;;  %v638_v13 = vmul.f32 %v614_v6, %v614_v6 }
 0x113   : > { %v639_v14 = vmul.f32 %v615_v8, %v615_v8 }
 0x114   : > { %629 = vst [vmem:[%s287_s17] sm:$0xff] %v842_v10  ;;  %v843_v15 = vpack.c.bf16 %v616_v11, %v615_v8  ;;  %632 = vadd.xlane.f32.xlu1 %v631_v12  ;;  %v641_v16 = vadd.f32 %v638_v13, %v637_v9  ;;  %v634_v17 = vadd.f32 %v616_v11, %v615_v8 }
 0x115   : > { %v640_v18 = vmul.f32 %v616_v11, %v616_v11 }
 0x116   : > { %630 = vst [vmem:[%s287_s17 + $0x8] sm:$0xff] %v843_v15  ;;  %642 = vadd.xlane.f32.xlu0 %v641_v16 }
 0x117   : > { %v644_v19 = vadd.f32 %v640_v18, %v639_v14 }
 0x118   : > { %635 = vadd.xlane.f32.xlu1 %v634_v17 }
 0x11b   : > { %v697_v26 = vld [vmem:[%s287_s17] sm:$0xff] (%p977_p5) }
 0x11c   : > { %645 = vadd.xlane.f32.xlu1 %v644_v19  ;;  %698 = vst [vmem:[%s667_s29] sm:$0xff] (%p977_p5), %v697_v26 }
 0x11d   : > { %v699_v27 = vld [vmem:[%s287_s17 + $0x8] sm:$0xff] (%p977_p5) }
 0x11e   : > { %700 = vst [vmem:[%s667_s29 + $0x10] sm:$0xff] (%p977_p5), %v699_v27 }
 0x1a1   : > { %v633_v20 = vpop.xlane.xlu1 %632 }
 0x1a3   : > { %v643_v21 = vpop.xlane.xlu0 %642 }
 0x1a4   : > { %v648_v22 = vsel %vm647_vm1, %v633_v20, %v643_v21 }
 0x1a5   : > { %651 = vst.msk [vmem:[%s301_s25] sm:$0xff] %vm650_vm2, %v648_v22  ;;  %v636_v23 = vpop.xlane.xlu1 %635  ;;  %664 = sbr.rel (!%p977_p5) target bundleno = 428 (0x1ac), region = 74 }
 0x1a9   : > { %v646_v24 = vpop.xlane.xlu1 %645 }
 0x1aa   : > { %v649_v25 = vsel %vm647_vm1, %v636_v23, %v646_v24 }
 0x1ab   : > { %652 = vst.msk [vmem:[%s301_s25 + $0x8] sm:$0xff] %vm650_vm2, %v649_v25 }
 0x1ac PF: > { %p12_p11 = scmp.ge.s32.totalorder %s965_s19, 4   ;;  %s1070_s15 = smov %s914_s16 }
 0x1ad   : > { %s1071_s16 = smov %s975_s22  ;;  %s1072_s17 = smov %s965_s19 }
 0x1ae   :  { %14 = sbr.rel (!%p12_p11) target bundleno = 2 (0x2), region = 158 }

// kernel: mul.37
= control target key start
LH: loop header
LB: loop body
LE: loop exit
PB: predicated region body
PF: predicated region fallthrough
CT: control target
= control target key end

     0   :  { %s67_s8 = smov 112   ;;  %s68_s11 = smov 80   ;;  %vm3_vm0 = vcmask 130048   ;;  %vm9_vm1 = vcmask 1048448   ;;  %vm15_vm2 = vcmask 917248   ;;  %vm21_vm3 = vcmask 786048   ;;  %s111_s0 = inlined_call_operand.vmem [shape: f32[32,16], index: 0, kind: input, shape index: {}]   ;;  %s112_s1 = inlined_call_operand.vmem [shape: f32[512], index: 1, kind: output, shape index: {}]  }
   0x1   :  { %v53_v0 = vld [vmem:[%s111_s0 + $0x7] ss:$8 sm:$0xf]   ;;  %v55_v1 = vld [vmem:[%s111_s0 + $0x5] ss:$8 sm:$0xf]  }
   0x2   :  { %7 = vrot.lane.b32.xlu0 %v53_v0, %s67_s8  ;;  %19 = vrot.lane.b32.xlu1 %v55_v1, %s68_s11  ;;  %v54_v2 = vld [vmem:[%s111_s0 + $0x6] ss:$8 sm:$0xf]   ;;  %v56_v3 = vld [vmem:[%s111_s0 + $0x4] ss:$8 sm:$0xf]  }
   0x3   :  { %s69_s16 = smov 96   ;;  %v2_v4 = vld [vmem:[%s111_s0] ss:$8 sm:$0xf]   ;;  %s70_s19 = smov 64   ;;  %vm27_vm4 = vcmask 654848  }
   0x4   :  { %v57_v5 = vld [vmem:[%s111_s0 + $0x3] ss:$8 sm:$0xf]   ;;  %4 = vst.msk [vmem:[#allocation0] sm:$0xf] %vm3_vm0, %v2_v4   ;;  %s71_s24 = smov 48  }
   0x5   :  { %v58_v6 = vld [vmem:[%s111_s0 + $0x2] ss:$8 sm:$0xf]   ;;  %s72_s25 = smov 32   ;;  %vm33_vm5 = vcmask 523648   ;;  %vm39_vm6 = vcmask 392448  }
   0x6   :  { %13 = vrot.lane.b32.xlu0 %v54_v2, %s69_s16  ;;  %25 = vrot.lane.b32.xlu1 %v56_v3, %s70_s19  ;;  %v59_v7 = vld [vmem:[%s111_s0 + $0x1] ss:$8 sm:$0xf]   ;;  %s73_s0 = smov 16   ;;  %vm45_vm7 = vcmask 261248  }
   0xa   :  { %31 = vrot.lane.b32.xlu0 %v57_v5, %s71_s24  ;;  %37 = vrot.lane.b32.xlu1 %v58_v6, %s72_s25 }
   0xe   :  { %43 = vrot.lane.b32.xlu0 %v59_v7, %s73_s0 }
  0x74   :  { %v8_v8 = vpop.permute.xlu0 %7   ;;  %v20_v9 = vpop.permute.xlu1 %19  }
  0x75   :  { %10 = vst.msk [vmem:[#allocation0] sm:$0xf] %vm9_vm1, %v8_v8  }
  0x78   :  { %v14_v10 = vpop.permute.xlu0 %13   ;;  %v26_v11 = vpop.permute.xlu1 %25  }
  0x79   :  { %16 = vst.msk [vmem:[#allocation0] sm:$0xf] %vm15_vm2, %v14_v10  }
  0x7a   :  { %22 = vst.msk [vmem:[#allocation0] sm:$0xf] %vm21_vm3, %v20_v9  }
  0x7b   :  { %28 = vst.msk [vmem:[#allocation0] sm:$0xf] %vm27_vm4, %v26_v11  }
  0x7c   :  { %v32_v12 = vpop.permute.xlu0 %31   ;;  %v38_v13 = vpop.permute.xlu1 %37  }
  0x7d   :  { %34 = vst.msk [vmem:[#allocation0] sm:$0xf] %vm33_vm5, %v32_v12  }
  0x7e   :  { %40 = vst.msk [vmem:[#allocation0] sm:$0xf] %vm39_vm6, %v38_v13  }
  0x80   :  { %v44_v14 = vpop.permute.xlu0 %43  }
  0x81   :  { %46 = vst.msk [vmem:[#allocation0] sm:$0xf] %vm45_vm7, %v44_v14  }
  0x88   :  { %v50_v15 = vld [vmem:[#allocation0] sm:$0xf] }
  0x89   :  { %52 = vst [vmem:[%s112_s1] sm:$0xf] %v50_v15 }

// kernel: cnn_forward.4
= control target key start
LH: loop header
LB: loop body
LE: loop exit
PB: predicated region body
PF: predicated region fallthrough
CT: control target
= control target key end

     0   :  { %v1599_v1 = vmov 0   ;;  %vm866_vm0 = vcmask 130048   ;;  %vm1169_vm1 = vcmask 7168   ;;  %vm1174_vm2 = vcmask 15360   ;;  %s1983_s0 = inlined_call_operand.vmem [shape: bf16[4,400,128], index: 0, kind: input, shape index: {}]   ;;  %s1984_s1 = inlined_call_operand.vmem [shape: bf16[32,400], index: 1, kind: input, shape index: {}]   ;;  %s1985_s2 = inlined_call_operand.vmem [shape: f32[32,1], index: 2, kind: input, shape index: {}]   ;;  %s1986_s3 = inlined_call_operand.vmem [shape: bf16[32,128], index: 3, kind: output, shape index: {0}]   ;;  %s1987_s4 = inlined_call_operand.vmem [shape: f32[1,32,2], index: 4, kind: output, shape index: {1}]  }
   0x1   :  { %v1487_v0 = vld [vmem:[%s1983_s0 + $0xc8] sm:$0xff]   ;;  %1485 = vset.pattern.permute.xlu0 %v1599_v1  ;;  %1486 = vset.pattern.permute.xlu1 %v1599_v1  ;;  %v1488_v2 = vld [vmem:[%s1983_s0 + $0x258] sm:$0xff]   ;;  %v1489_v3 = vld [vmem:[%s1983_s0] sm:$0xff]  }
   0x2   :  { %873 = vmatprep.subr.bf16.mxu0 %v1487_v0  ;;  %979 = vmatprep.subr.bf16.mxu1 %v1488_v2  ;;  %v1490_v4 = vld [vmem:[%s1983_s0 + $0x190] sm:$0xff]   ;;  %v1492_v6 = vld [vmem:[%s1983_s0 + $0x260] sm:$0xff]   ;;  %v1493_v7 = vld [vmem:[%s1983_s0 + $0x8] sm:$0xff]  }
   0x3   :  { %874 = vmatpush1.bf16.msra.mxu0 %v1489_v3  ;;  %v1491_v5 = vld [vmem:[%s1983_s0 + $0xd0] sm:$0xff]   ;;  %980 = vmatpush1.bf16.msra.mxu1 %v1490_v4  ;;  %v1494_v8 = vld [vmem:[%s1983_s0 + $0x198] sm:$0xff]   ;;  %v1496_v10 = vld [vmem:[%s1983_s0 + $0x268] sm:$0xff]  }
   0x4   :  { %875 = vmatprep.subr.bf16.mxu0 %v1491_v5  ;;  %981 = vmatprep.subr.bf16.mxu1 %v1492_v6  ;;  %v1495_v9 = vld [vmem:[%s1983_s0 + $0xd8] sm:$0xff]   ;;  %v1497_v11 = vld [vmem:[%s1983_s0 + $0x10] sm:$0xff]   ;;  %v1498_v12 = vld [vmem:[%s1983_s0 + $0x1a0] sm:$0xff]  }
   0x5   :  { %v1499_v13 = vld [vmem:[%s1983_s0 + $0xe0] sm:$0xff]   ;;  %v1500_v14 = vld [vmem:[%s1983_s0 + $0x270] sm:$0xff]   ;;  %v1501_v15 = vld [vmem:[%s1983_s0 + $0x18] sm:$0xff]  }
   0x6   :  { %v1502_v16 = vld [vmem:[%s1983_s0 + $0x1a8] sm:$0xff]   ;;  %v1504_v18 = vld [vmem:[%s1983_s0 + $0x278] sm:$0xff]   ;;  %v1505_v19 = vld [vmem:[%s1983_s0 + $0x20] sm:$0xff]  }
   0x7   :  { %876 = vmatpush1.bf16.msra.mxu0 %v1493_v7  ;;  %982 = vmatpush1.bf16.msra.mxu1 %v1494_v8  ;;  %v1503_v17 = vld [vmem:[%s1983_s0 + $0xe8] sm:$0xff]   ;;  %v1506_v20 = vld [vmem:[%s1983_s0 + $0x1b0] sm:$0xff]   ;;  %v1508_v22 = vld [vmem:[%s1983_s0 + $0x280] sm:$0xff]  }
   0x8   :  { %877 = vmatprep.subr.bf16.mxu0 %v1495_v9  ;;  %983 = vmatprep.subr.bf16.mxu1 %v1496_v10  ;;  %v1507_v21 = vld [vmem:[%s1983_s0 + $0xf0] sm:$0xff]   ;;  %v1509_v23 = vld [vmem:[%s1983_s0 + $0x28] sm:$0xff]   ;;  %v1510_v24 = vld [vmem:[%s1983_s0 + $0x1b8] sm:$0xff]  }
   0x9   :  { %v1511_v25 = vld [vmem:[%s1983_s0 + $0xf8] sm:$0xff]   ;;  %v1512_v26 = vld [vmem:[%s1983_s0 + $0x288] sm:$0xff]   ;;  %v1513_v27 = vld [vmem:[%s1983_s0 + $0x30] sm:$0xff]  }
   0xa   :  { %v1514_v28 = vld [vmem:[%s1983_s0 + $0x1c0] sm:$0xff]   ;;  %v1516_v30 = vld [vmem:[%s1983_s0 + $0x290] sm:$0xff]   ;;  %v1517_v31 = vld [vmem:[%s1983_s0 + $0x38] sm:$0xff]  }
   0xb   :  { %878 = vmatpush1.bf16.msra.mxu0 %v1497_v11  ;;  %984 = vmatpush1.bf16.msra.mxu1 %v1498_v12  ;;  %v1515_v29 = vld [vmem:[%s1983_s0 + $0x100] sm:$0xff]   ;;  %v1518_v32 = vld [vmem:[%s1983_s0 + $0x1c8] sm:$0xff]   ;;  %v1520_v34 = vld [vmem:[%s1983_s0 + $0x298] sm:$0xff]  }
   0xc   :  { %879 = vmatprep.subr.bf16.mxu0 %v1499_v13  ;;  %985 = vmatprep.subr.bf16.mxu1 %v1500_v14  ;;  %v1519_v33 = vld [vmem:[%s1983_s0 + $0x108] sm:$0xff]   ;;  %v1521_v35 = vld [vmem:[%s1983_s0 + $0x40] sm:$0xff]   ;;  %v1522_v36 = vld [vmem:[%s1983_s0 + $0x1d0] sm:$0xff]  }
   0xd   :  { %v1523_v37 = vld [vmem:[%s1983_s0 + $0x110] sm:$0xff]   ;;  %v1524_v38 = vld [vmem:[%s1983_s0 + $0x2a0] sm:$0xff]   ;;  %v1525_v39 = vld [vmem:[%s1983_s0 + $0x48] sm:$0xff]  }
   0xe   :  { %v1526_v40 = vld [vmem:[%s1983_s0 + $0x1d8] sm:$0xff]   ;;  %v1528_v42 = vld [vmem:[%s1983_s0 + $0x2a8] sm:$0xff]   ;;  %v1529_v43 = vld [vmem:[%s1983_s0 + $0x50] sm:$0xff]  }
   0xf   :  { %880 = vmatpush1.bf16.msra.mxu0 %v1501_v15  ;;  %986 = vmatpush1.bf16.msra.mxu1 %v1502_v16  ;;  %v1527_v41 = vld [vmem:[%s1983_s0 + $0x118] sm:$0xff]   ;;  %v1530_v44 = vld [vmem:[%s1983_s0 + $0x1e0] sm:$0xff]   ;;  %v1532_v46 = vld [vmem:[%s1983_s0 + $0x2b0] sm:$0xff]  }
  0x10   :  { %881 = vmatprep.subr.bf16.mxu0 %v1503_v17  ;;  %987 = vmatprep.subr.bf16.mxu1 %v1504_v18  ;;  %v1531_v45 = vld [vmem:[%s1983_s0 + $0x120] sm:$0xff]   ;;  %v1533_v47 = vld [vmem:[%s1983_s0 + $0x58] sm:$0xff]   ;;  %v1534_v48 = vld [vmem:[%s1983_s0 + $0x1e8] sm:$0xff]  }
  0x11   :  { %v1535_v49 = vld [vmem:[%s1983_s0 + $0x128] sm:$0xff]   ;;  %v1536_v50 = vld [vmem:[%s1983_s0 + $0x2b8] sm:$0xff]   ;;  %v1537_v51 = vld [vmem:[%s1983_s0 + $0x60] sm:$0xff]  }
  0x12   :  { %v1538_v52 = vld [vmem:[%s1983_s0 + $0x1f0] sm:$0xff]   ;;  %v1540_v54 = vld [vmem:[%s1983_s0 + $0x2c0] sm:$0xff]   ;;  %v1541_v55 = vld [vmem:[%s1983_s0 + $0x68] sm:$0xff]  }
  0x13   :  { %882 = vmatpush1.bf16.msra.mxu0 %v1505_v19  ;;  %988 = vmatpush1.bf16.msra.mxu1 %v1506_v20  ;;  %v1539_v53 = vld [vmem:[%s1983_s0 + $0x130] sm:$0xff]   ;;  %v1542_v56 = vld [vmem:[%s1983_s0 + $0x1f8] sm:$0xff]   ;;  %v1544_v58 = vld [vmem:[%s1983_s0 + $0x2c8] sm:$0xff]  }
  0x14   :  { %883 = vmatprep.subr.bf16.mxu0 %v1507_v21  ;;  %989 = vmatprep.subr.bf16.mxu1 %v1508_v22  ;;  %v1543_v57 = vld [vmem:[%s1983_s0 + $0x138] sm:$0xff]   ;;  %v1545_v59 = vld [vmem:[%s1983_s0 + $0x70] sm:$0xff]   ;;  %v1546_v60 = vld [vmem:[%s1983_s0 + $0x200] sm:$0xff]  }
  0x15   :  { %v1547_v61 = vld [vmem:[%s1983_s0 + $0x140] sm:$0xff]   ;;  %v1548_v62 = vld [vmem:[%s1983_s0 + $0x2d0] sm:$0xff]   ;;  %v1549_v63 = vld [vmem:[%s1983_s0 + $0x78] sm:$0xff]  }
  0x16   :  { %v1550_v0 = vld [vmem:[%s1983_s0 + $0x208] sm:$0xff]   ;;  %v1551_v1 = vld [vmem:[%s1984_s1] ss:$16 sps:$4 sm:$0xff]   ;;  %v1553_v2 = vld [vmem:[%s1984_s1 + $0x4] ss:$16 sps:$4 sm:$0xff]  }
  0x17   :  { %884 = vmatpush1.bf16.msra.mxu0 %v1509_v23  ;;  %990 = vmatpush1.bf16.msra.mxu1 %v1510_v24  ;;  %v1554_v3 = vld [vmem:[%s1983_s0 + $0x148] sm:$0xff]   ;;  %v1555_v4 = vld [vmem:[%s1983_s0 + $0x2d8] sm:$0xff]   ;;  %v1556_v5 = vld [vmem:[%s1983_s0 + $0x80] sm:$0xff]  }
  0x18   :  { %885 = vmatprep.subr.bf16.mxu0 %v1511_v25  ;;  %991 = vmatprep.subr.bf16.mxu1 %v1512_v26  ;;  %v1557_v6 = vld [vmem:[%s1983_s0 + $0x210] sm:$0xff]   ;;  %v1559_v8 = vld [vmem:[%s1983_s0 + $0x2e0] sm:$0xff]   ;;  %v1560_v9 = vld [vmem:[%s1983_s0 + $0x88] sm:$0xff]  }
  0x19   :  { %905 = vmatprep.mubr.bf16.mxu0 %v1553_v2  ;;  %1011 = vmatprep.mubr.bf16.mxu1 %v1553_v2  ;;  %v1558_v7 = vld [vmem:[%s1983_s0 + $0x150] sm:$0xff]   ;;  %v1561_v10 = vld [vmem:[%s1983_s0 + $0x218] sm:$0xff]   ;;  %v1563_v12 = vld [vmem:[%s1983_s0 + $0x2e8] sm:$0xff]  }
  0x1a   :  { %v1562_v11 = vld [vmem:[%s1983_s0 + $0x158] sm:$0xff]   ;;  %v1564_v13 = vld [vmem:[%s1983_s0 + $0x90] sm:$0xff]   ;;  %v1565_v14 = vld [vmem:[%s1983_s0 + $0x220] sm:$0xff]  }
  0x1b   :  { %886 = vmatpush1.bf16.msra.mxu0 %v1513_v27  ;;  %992 = vmatpush1.bf16.msra.mxu1 %v1514_v28  ;;  %v1566_v15 = vld [vmem:[%s1983_s0 + $0x160] sm:$0xff]   ;;  %v1567_v16 = vld [vmem:[%s1983_s0 + $0x2f0] sm:$0xff]   ;;  %v1568_v17 = vld [vmem:[%s1983_s0 + $0x98] sm:$0xff]  }
  0x1c   :  { %887 = vmatprep.subr.bf16.mxu0 %v1515_v29  ;;  %993 = vmatprep.subr.bf16.mxu1 %v1516_v30  ;;  %v1569_v18 = vld [vmem:[%s1983_s0 + $0x228] sm:$0xff]   ;;  %v1571_v20 = vld [vmem:[%s1983_s0 + $0x2f8] sm:$0xff]   ;;  %v1572_v21 = vld [vmem:[%s1983_s0 + $0xa0] sm:$0xff]  }
  0x1d   :  { %v1570_v19 = vld [vmem:[%s1983_s0 + $0x168] sm:$0xff]   ;;  %v1573_v22 = vld [vmem:[%s1983_s0 + $0x230] sm:$0xff]   ;;  %v1575_v24 = vld [vmem:[%s1983_s0 + $0x300] sm:$0xff]  }
  0x1e   :  { %v1574_v23 = vld [vmem:[%s1983_s0 + $0x170] sm:$0xff]   ;;  %v1576_v25 = vld [vmem:[%s1983_s0 + $0xa8] sm:$0xff]   ;;  %v1577_v26 = vld [vmem:[%s1983_s0 + $0x238] sm:$0xff]  }
  0x1f   :  { %888 = vmatpush1.bf16.msra.mxu0 %v1517_v31  ;;  %994 = vmatpush1.bf16.msra.mxu1 %v1518_v32  ;;  %v1578_v27 = vld [vmem:[%s1983_s0 + $0x178] sm:$0xff]   ;;  %v1579_v28 = vld [vmem:[%s1983_s0 + $0x308] sm:$0xff]   ;;  %v1580_v29 = vld [vmem:[%s1983_s0 + $0xb0] sm:$0xff]  }
  0x20   :  { %889 = vmatprep.subr.bf16.mxu0 %v1519_v33  ;;  %995 = vmatprep.subr.bf16.mxu1 %v1520_v34  ;;  %v1581_v30 = vld [vmem:[%s1983_s0 + $0x240] sm:$0xff]   ;;  %v1586_v34 = vld [vmem:[%s1983_s0 + $0x310] sm:$0xff]  }
  0x21   :  { %v1582_v31 = vld [vmem:[%s1984_s1 + $0x24] ss:$16 sps:$4 sm:$0xff]   ;;  %v1584_v32 = vld [vmem:[%s1984_s1 + $0x20] ss:$16 sps:$4 sm:$0xff]  }
  0x22   :  { %v1585_v33 = vld [vmem:[%s1983_s0 + $0x180] sm:$0xff]  }
  0x23   :  { %890 = vmatpush1.bf16.msra.mxu0 %v1521_v35  ;;  %996 = vmatpush1.bf16.msra.mxu1 %v1522_v36  ;;  %v1587_v35 = vld [vmem:[%s1983_s0 + $0xb8] sm:$0xff]   ;;  %v1588_v36 = vld [vmem:[%s1983_s0 + $0x248] sm:$0xff]  }
  0x24   :  { %891 = vmatprep.subr.bf16.mxu0 %v1523_v37  ;;  %997 = vmatprep.subr.bf16.mxu1 %v1524_v38  ;;  %v1589_v37 = vld [vmem:[%s1983_s0 + $0x188] sm:$0xff]   ;;  %v1590_v38 = vld [vmem:[%s1983_s0 + $0x318] sm:$0xff]  }
  0x27   :  { %892 = vmatpush1.bf16.msra.mxu0 %v1525_v39  ;;  %998 = vmatpush1.bf16.msra.mxu1 %v1526_v40  ;;  %v1591_v39 = vld [vmem:[%s1983_s0 + $0xc0] sm:$0xff]   ;;  %v1592_v40 = vld [vmem:[%s1983_s0 + $0x250] sm:$0xff]  }
  0x28   :  { %893 = vmatprep.subr.bf16.mxu0 %v1527_v41  ;;  %999 = vmatprep.subr.bf16.mxu1 %v1528_v42  ;;  %v1593_v41 = vld [vmem:[%s1984_s1 + $0x8] ss:$16 sps:$4 sm:$0xff]   ;;  %v1595_v42 = vld [vmem:[%s1984_s1 + $0xc] ss:$16 sps:$4 sm:$0xff]  }
  0x2b   :  { %894 = vmatpush1.bf16.msra.mxu0 %v1529_v43  ;;  %1000 = vmatpush1.bf16.msra.mxu1 %v1530_v44  ;;  %v1596_v43 = vld [vmem:[%s1984_s1 + $0x2c] ss:$16 sps:$4 sm:$0xff]   ;;  %v1097_v44 = vld [vmem:[%s1985_s2] sm:$0xff] }
  0x2c   :  { %895 = vmatprep.subr.bf16.mxu0 %v1531_v45  ;;  %1001 = vmatprep.subr.bf16.mxu1 %v1532_v46  ;;  %v1099_v45 = vld [vmem:[%s1985_s2 + $0x10] sm:$0xff]  ;;  %v1098_v46 = vld [vmem:[%s1985_s2 + $0x8] sm:$0xff] }
  0x2d   :  { %1103 = vperm.xlu0 %1485, %v1097_v44   ;;  %1113 = vperm.xlu1 %1486, %v1099_v45  }
  0x2f   :  { %896 = vmatpush1.bf16.msra.mxu0 %v1533_v47  ;;  %1002 = vmatpush1.bf16.msra.mxu1 %v1534_v48  ;;  %v1100_v47 = vld [vmem:[%s1985_s2 + $0x18] sm:$0xff] }
  0x30   :  { %897 = vmatprep.subr.bf16.mxu0 %v1535_v49  ;;  %1003 = vmatprep.subr.bf16.mxu1 %v1536_v50  ;;  %v1598_v48 = vld [vmem:[%s1984_s1 + $0x28] ss:$16 sps:$4 sm:$0xff]  }
  0x31   :  { %1108 = vperm.xlu0 %1485, %v1098_v46   ;;  %1118 = vperm.xlu1 %1486, %v1100_v47  }
  0x33   :  { %898 = vmatpush1.bf16.msra.mxu0 %v1537_v51  ;;  %1004 = vmatpush1.bf16.msra.mxu1 %v1538_v52 }
  0x34   :  { %899 = vmatprep.subr.bf16.mxu0 %v1539_v53  ;;  %1005 = vmatprep.subr.bf16.mxu1 %v1540_v54 }
  0x37   :  { %900 = vmatpush1.bf16.msra.mxu0 %v1541_v55  ;;  %1006 = vmatpush1.bf16.msra.mxu1 %v1542_v56 }
  0x38   :  { %901 = vmatprep.subr.bf16.mxu0 %v1543_v57  ;;  %1007 = vmatprep.subr.bf16.mxu1 %v1544_v58 }
  0x3b   :  { %902 = vmatpush1.bf16.msra.mxu0 %v1545_v59  ;;  %1008 = vmatpush1.bf16.msra.mxu1 %v1546_v60 }
  0x3c   :  { %903 = vmatprep.subr.bf16.mxu0 %v1547_v61  ;;  %1009 = vmatprep.subr.bf16.mxu1 %v1548_v62 }
  0x3f   :  { %904 = vmatpush1.bf16.msra.mxu0 %v1549_v63  ;;  %1010 = vmatpush1.bf16.msra.mxu1 %v1550_v0 }
  0x40   :  { %926 = vmatprep.subr.bf16.mxu0 %v1554_v3  ;;  %1032 = vmatprep.subr.bf16.mxu1 %v1555_v4 }
  0x42   :  { %906 = vmatmul.mubr.bf16.vlgmr.msra.gmra.mrb[0].mxu0 %v1551_v1  ;;  %1012 = vmatmul.mubr.bf16.vlgmr.msra.gmra.mrb[0].mxu1 %v1551_v1 }
  0x43   :  { %927 = vmatpush1.bf16.msra.mxu0 %v1556_v5  ;;  %1033 = vmatpush1.bf16.msra.mxu1 %v1557_v6 }
  0x44   :  { %928 = vmatprep.subr.bf16.mxu0 %v1558_v7  ;;  %1034 = vmatprep.subr.bf16.mxu1 %v1559_v8 }
  0x45   :  { %915 = vmatprep.mubr.bf16.mxu0 %v1582_v31  ;;  %1021 = vmatprep.mubr.bf16.mxu1 %v1582_v31 }
  0x47   :  { %929 = vmatpush1.bf16.msra.mxu0 %v1560_v9  ;;  %1035 = vmatpush1.bf16.msra.mxu1 %v1561_v10 }
  0x48   :  { %930 = vmatprep.subr.bf16.mxu0 %v1562_v11  ;;  %1036 = vmatprep.subr.bf16.mxu1 %v1563_v12 }
  0x4a   :  { %916 = vmatmul.mubr.bf16.gmra.mrb[4].mxu0 %v1584_v32  ;;  %1022 = vmatmul.mubr.bf16.gmra.mrb[4].mxu1 %v1584_v32 }
  0x4b   :  { %931 = vmatpush1.bf16.msra.mxu0 %v1564_v13  ;;  %1037 = vmatpush1.bf16.msra.mxu1 %v1565_v14 }
  0x4c   :  { %932 = vmatprep.subr.bf16.mxu0 %v1566_v15  ;;  %1038 = vmatprep.subr.bf16.mxu1 %v1567_v16 }
  0x4d   :  { %1445 = vmatprep.mubr.msk.bf16.mxu0 %vm866_vm0, %v1595_v42  ;;  %1447 = vmatprep.mubr.msk.bf16.mxu1 %vm866_vm0, %v1595_v42 }
  0x4f   :  { %933 = vmatpush1.bf16.msra.mxu0 %v1568_v17  ;;  %1039 = vmatpush1.bf16.msra.mxu1 %v1569_v18 }
  0x50   :  { %934 = vmatprep.subr.bf16.mxu0 %v1570_v19  ;;  %1040 = vmatprep.subr.bf16.mxu1 %v1571_v20 }
  0x53   :  { %935 = vmatpush1.bf16.msra.mxu0 %v1572_v21  ;;  %1041 = vmatpush1.bf16.msra.mxu1 %v1573_v22 }
  0x54   :  { %936 = vmatprep.subr.bf16.mxu0 %v1574_v23  ;;  %1042 = vmatprep.subr.bf16.mxu1 %v1575_v24 }
  0x57   :  { %937 = vmatpush1.bf16.msra.mxu0 %v1576_v25  ;;  %1043 = vmatpush1.bf16.msra.mxu1 %v1577_v26 }
  0x58   :  { %938 = vmatprep.subr.bf16.mxu0 %v1578_v27  ;;  %1044 = vmatprep.subr.bf16.mxu1 %v1579_v28 }
  0x5b   :  { %939 = vmatpush1.bf16.msra.mxu0 %v1580_v29  ;;  %1045 = vmatpush1.bf16.msra.mxu1 %v1581_v30 }
  0x5c   :  { %940 = vmatprep.subr.bf16.mxu0 %v1585_v33  ;;  %1046 = vmatprep.subr.bf16.mxu1 %v1586_v34 }
  0x5f   :  { %941 = vmatpush1.bf16.msra.mxu0 %v1587_v35  ;;  %1047 = vmatpush1.bf16.msra.mxu1 %v1588_v36 }
  0x60   :  { %942 = vmatprep.subr.bf16.mxu0 %v1589_v37  ;;  %1048 = vmatprep.subr.bf16.mxu1 %v1590_v38 }
  0x63   :  { %943 = vmatpush1.bf16.msra.mxu0 %v1591_v39  ;;  %1049 = vmatpush1.bf16.msra.mxu1 %v1592_v40 }
  0x66   :  { %959 = vmatmul.mubr.bf16.vlgmr.msra.gmra.mrb[0].mxu0 %v1593_v41  ;;  %1065 = vmatmul.mubr.bf16.vlgmr.msra.gmra.mrb[0].mxu1 %v1593_v41 }
  0x67   :  { %1446 = vmatprep.mubr.msk.bf16.mxu0 %vm866_vm0, %v1596_v43  ;;  %1448 = vmatprep.mubr.msk.bf16.mxu1 %vm866_vm0, %v1596_v43 }
  0x6e   :  { %969 = vmatmul.mubr.bf16.gmra.mrb[4].mxu0 %v1598_v48  ;;  %1075 = vmatmul.mubr.bf16.gmra.mrb[4].mxu1 %v1598_v48 }
  0xac   :  { %v1104_v49 = vpop.permute.xlu0 %1103  ;;  %v1114_v0 = vpop.permute.xlu1 %1113 }
  0xb0   :  { %v1109_v2 = vpop.permute.xlu0 %1108  ;;  %v1119_v24 = vpop.permute.xlu1 %1118 }
 0x139   :  { %v960_v50 = vpop.f32.mrb[0].mxu0  ;;  %v1066_v51 = vpop.f32.mrb[0].mxu1 }
 0x13a   :  { %v962_v52 = vpop.f32.mrb[1].mxu0  ;;  %v1068_v54 = vpop.f32.mrb[1].mxu1 }
 0x13b   :  { %v1085_v53 = vmax.f32 %v960_v50, %v962_v52  ;;  %v964_v55 = vpop.f32.mrb[2].mxu0  ;;  %v1089_v56 = vmax.f32 %v1066_v51, %v1068_v54  ;;  %v1070_v57 = vpop.f32.mrb[2].mxu1 }
 0x13c   :  { %v966_v58 = vpop.f32.mrb[3].mxu0  ;;  %v1072_v60 = vpop.f32.mrb[3].mxu1 }
 0x13d   :  { %v1086_v59 = vmax.f32 %v964_v55, %v966_v58  ;;  %v1093_v61 = vmax.f32 %v1085_v53, %v1089_v56  ;;  %v1090_v62 = vmax.f32 %v1070_v57, %v1072_v60 }
 0x13f   :  { %v1094_v63 = vmax.f32 %v1086_v59, %v1090_v62  ;;  %v1121_v1 = vadd.f32 %v1104_v49, %v1093_v61 }
 0x141   :  { %v970_v3 = vpop.f32.mrb[4].mxu0  ;;  %v1076_v4 = vpop.f32.mrb[4].mxu1  ;;  %v1125_v6 = vmax.f32 %v1121_v1, 0.0  ;;  %v1122_v7 = vadd.f32 %v1109_v2, %v1094_v63 }
 0x142   :  { %v972_v5 = vpop.f32.mrb[5].mxu0  ;;  %v1078_v9 = vpop.f32.mrb[5].mxu1 }
 0x143   :  { %v1087_v8 = vmax.f32 %v970_v3, %v972_v5  ;;  %v974_v10 = vpop.f32.mrb[6].mxu0  ;;  %v1091_v11 = vmax.f32 %v1076_v4, %v1078_v9  ;;  %v1080_v12 = vpop.f32.mrb[6].mxu1  ;;  %1149 = vadd.xlane.f32.xlu0 %v1125_v6  ;;  %v1126_v14 = vmax.f32 %v1122_v7, 0.0  ;;  %v1157_v22 = vmul.f32 %v1125_v6, %v1125_v6 }
 0x144   :  { %v976_v13 = vpop.f32.mrb[7].mxu0  ;;  %v1082_v16 = vpop.f32.mrb[7].mxu1 }
 0x145   :  { %v1088_v15 = vmax.f32 %v974_v10, %v976_v13  ;;  %v1095_v17 = vmax.f32 %v1087_v8, %v1091_v11  ;;  %v1092_v18 = vmax.f32 %v1080_v12, %v1082_v16  ;;  %1151 = vadd.xlane.f32.xlu1 %v1126_v14  ;;  %v1460_v19 = vpack.c.bf16 %v1126_v14, %v1125_v6 }
 0x146   :  { %v1158_v20 = vmul.f32 %v1126_v14, %v1126_v14 }
 0x147   :  { %1461 = vst [vmem:[%s1986_s3] sm:$0xff] %v1460_v19   ;;  %v1096_v21 = vmax.f32 %v1088_v15, %v1092_v18  ;;  %v1123_v23 = vadd.f32 %v1114_v0, %v1095_v17 }
 0x148   :  { %1163 = vadd.xlane.f32.xlu0 %v1158_v20 }
 0x149   :  { %v1124_v25 = vadd.f32 %v1119_v24, %v1096_v21  ;;  %1161 = vadd.xlane.f32.xlu1 %v1157_v22  ;;  %v1127_v26 = vmax.f32 %v1123_v23, 0.0 }
 0x14b   :  { %v1128_v27 = vmax.f32 %v1124_v25, 0.0  ;;  %v1159_v28 = vmul.f32 %v1127_v26, %v1127_v26 }
 0x14c   :  { %1153 = vadd.xlane.f32.xlu0 %v1127_v26 }
 0x14d   :  { %v1465_v29 = vpack.c.bf16 %v1128_v27, %v1127_v26  ;;  %1165 = vadd.xlane.f32.xlu1 %v1159_v28  ;;  %v1160_v30 = vmul.f32 %v1128_v27, %v1128_v27 }
 0x14f   :  { %1467 = vst [vmem:[%s1986_s3 + $0x8] sm:$0xff] %v1465_v29  }
 0x150   :  { %1155 = vadd.xlane.f32.xlu0 %v1128_v27 }
 0x154   :  { %1167 = vadd.xlane.f32.xlu0 %v1160_v30 }
 0x1d0   :  { %v1150_v31 = vpop.xlane.xlu0 %1149 }
 0x1d2   :  { %v1152_v32 = vpop.xlane.xlu1 %1151 }
 0x1d5   :  { %v1164_v33 = vpop.xlane.xlu0 %1163 }
 0x1d6   :  { %v1171_v34 = vsel %vm1169_vm1, %v1152_v32, %v1164_v33  ;;  %v1162_v35 = vpop.xlane.xlu1 %1161 }
 0x1d7   :  { %1176 = vst.msk [vmem:[%s1987_s4 + $0x8] sm:$0xff] %vm1174_vm2, %v1171_v34  ;;  %v1170_v36 = vsel %vm1169_vm1, %v1150_v31, %v1162_v35 }
 0x1d8   :  { %1175 = vst.msk [vmem:[%s1987_s4] sm:$0xff] %vm1174_vm2, %v1170_v36 }
 0x1d9   :  { %v1154_v37 = vpop.xlane.xlu0 %1153 }
 0x1da   :  { %v1166_v38 = vpop.xlane.xlu1 %1165 }
 0x1db   :  { %v1172_v39 = vsel %vm1169_vm1, %v1154_v37, %v1166_v38 }
 0x1dc   :  { %1177 = vst.msk [vmem:[%s1987_s4 + $0x10] sm:$0xff] %vm1174_vm2, %v1172_v39 }
 0x1dd   :  { %v1156_v40 = vpop.xlane.xlu0 %1155 }
 0x1e1   :  { %v1168_v41 = vpop.xlane.xlu0 %1167 }
 0x1e2   :  { %v1173_v42 = vsel %vm1169_vm1, %v1156_v40, %v1168_v41 }
 0x1e3   :  { %1178 = vst.msk [vmem:[%s1987_s4 + $0x18] sm:$0xff] %vm1174_vm2, %v1173_v42 }

// kernel: cnn_forward.5
= control target key start
LH: loop header
LB: loop body
LE: loop exit
PB: predicated region body
PF: predicated region fallthrough
CT: control target
= control target key end

     0   :  { %s624_s1 = inlined_call_operand.vmem [shape: bf16[512,128], index: 1, kind: input, shape index: {}]   ;;  %s625_s0 = inlined_call_operand.vmem [shape: bf16[8,512], index: 0, kind: input, shape index: {}]   ;;  %s626_s2 = inlined_call_operand.vmem [shape: f32[1,128], index: 2, kind: input, shape index: {}]   ;;  %s627_s3 = inlined_call_operand.vmem [shape: f32[8,128], index: 3, kind: output, shape index: {}]  }
   0x1   :  { %v460_v0 = vld [vmem:[%s624_s1 + $0x40] sm:$0xff]   ;;  %v464_v4 = vld [vmem:[%s624_s1 + $0x48] sm:$0xff]   ;;  %v468_v8 = vld [vmem:[%s624_s1 + $0x50] sm:$0xff]  }
   0x2   :  { %v461_v1 = vld [vmem:[%s624_s1 + $0xc0] sm:$0xff]   ;;  %416 = vmatprep.subr.bf16.mxu0 %v460_v0  ;;  %v465_v5 = vld [vmem:[%s624_s1 + $0xc8] sm:$0xff]   ;;  %v469_v9 = vld [vmem:[%s624_s1 + $0xd0] sm:$0xff]  }
   0x3   :  { %v462_v2 = vld [vmem:[%s624_s1] sm:$0xff]   ;;  %438 = vmatprep.subr.bf16.mxu1 %v461_v1  ;;  %v466_v6 = vld [vmem:[%s624_s1 + $0x8] sm:$0xff]   ;;  %v470_v10 = vld [vmem:[%s624_s1 + $0x10] sm:$0xff]  }
   0x4   :  { %v463_v3 = vld [vmem:[%s624_s1 + $0x80] sm:$0xff]   ;;  %417 = vmatpush3.bf16.msra.mxu0 %v462_v2  ;;  %v467_v7 = vld [vmem:[%s624_s1 + $0x88] sm:$0xff]   ;;  %v471_v11 = vld [vmem:[%s624_s1 + $0x90] sm:$0xff]  }
   0x5   :  { %439 = vmatpush3.bf16.msra.mxu1 %v463_v3  ;;  %418 = vmatprep.subr.bf16.mxu0 %v464_v4  ;;  %v472_v12 = vld [vmem:[%s624_s1 + $0x58] sm:$0xff]   ;;  %v476_v16 = vld [vmem:[%s624_s1 + $0x60] sm:$0xff]   ;;  %v480_v20 = vld [vmem:[%s624_s1 + $0x68] sm:$0xff]  }
   0x6   :  { %440 = vmatprep.subr.bf16.mxu1 %v465_v5  ;;  %v473_v13 = vld [vmem:[%s624_s1 + $0xd8] sm:$0xff]   ;;  %v477_v17 = vld [vmem:[%s624_s1 + $0xe0] sm:$0xff]   ;;  %v481_v21 = vld [vmem:[%s624_s1 + $0xe8] sm:$0xff]  }
   0x7   :  { %v474_v14 = vld [vmem:[%s624_s1 + $0x18] sm:$0xff]   ;;  %v478_v18 = vld [vmem:[%s624_s1 + $0x20] sm:$0xff]   ;;  %v482_v22 = vld [vmem:[%s624_s1 + $0x28] sm:$0xff]  }
   0x8   :  { %419 = vmatpush3.bf16.msra.mxu0 %v466_v6  ;;  %v475_v15 = vld [vmem:[%s624_s1 + $0x98] sm:$0xff]   ;;  %v479_v19 = vld [vmem:[%s624_s1 + $0xa0] sm:$0xff]   ;;  %v483_v23 = vld [vmem:[%s624_s1 + $0xa8] sm:$0xff]  }
   0x9   :  { %441 = vmatpush3.bf16.msra.mxu1 %v467_v7  ;;  %420 = vmatprep.subr.bf16.mxu0 %v468_v8  ;;  %v484_v24 = vld [vmem:[%s624_s1 + $0x70] sm:$0xff]   ;;  %v488_v28 = vld [vmem:[%s624_s1 + $0x78] sm:$0xff]   ;;  %v15_v32 = vld [vmem:[%s625_s0] sm:$0xff] }
   0xa   :  { %442 = vmatprep.subr.bf16.mxu1 %v469_v9  ;;  %v485_v25 = vld [vmem:[%s624_s1 + $0xf0] sm:$0xff]   ;;  %v489_v29 = vld [vmem:[%s624_s1 + $0xf8] sm:$0xff]   ;;  %v16_v33 = vld [vmem:[%s625_s0 + $0x8] sm:$0xff]  ;;  %v380_v34 = vcombine.low %v15_v32, %v15_v32  ;;  %v381_v35 = vcombine.high %v15_v32, %v15_v32 }
   0xb   :  { %v486_v26 = vld [vmem:[%s624_s1 + $0x30] sm:$0xff]   ;;  %v490_v30 = vld [vmem:[%s624_s1 + $0x38] sm:$0xff]   ;;  %v382_v36 = vcombine.low %v16_v33, %v16_v33  ;;  %v383_v37 = vcombine.high %v16_v33, %v16_v33  ;;  %v379_v40 = vld [vmem:[%s626_s2] ss:$0 sm:$0xff] }
   0xc   :  { %421 = vmatpush3.bf16.msra.mxu0 %v470_v10  ;;  %v487_v27 = vld [vmem:[%s624_s1 + $0xb0] sm:$0xff]   ;;  %v491_v31 = vld [vmem:[%s624_s1 + $0xb8] sm:$0xff]   ;;  %326 = vmatprep.mubr.bf16.mxu0 %v381_v35 }
   0xd   :  { %443 = vmatpush3.bf16.msra.mxu1 %v471_v11  ;;  %422 = vmatprep.subr.bf16.mxu0 %v472_v12 }
   0xe   :  { %444 = vmatprep.subr.bf16.mxu1 %v473_v13  ;;  %366 = vmatprep.mubr.bf16.mxu1 %v383_v37 }
  0x10   :  { %423 = vmatpush3.bf16.msra.mxu0 %v474_v14 }
  0x11   :  { %445 = vmatpush3.bf16.msra.mxu1 %v475_v15  ;;  %424 = vmatprep.subr.bf16.mxu0 %v476_v16 }
  0x12   :  { %446 = vmatprep.subr.bf16.mxu1 %v477_v17 }
  0x14   :  { %425 = vmatpush3.bf16.msra.mxu0 %v478_v18 }
  0x15   :  { %447 = vmatpush3.bf16.msra.mxu1 %v479_v19  ;;  %426 = vmatprep.subr.bf16.mxu0 %v480_v20 }
  0x16   :  { %448 = vmatprep.subr.bf16.mxu1 %v481_v21 }
  0x18   :  { %427 = vmatpush3.bf16.msra.mxu0 %v482_v22 }
  0x19   :  { %449 = vmatpush3.bf16.msra.mxu1 %v483_v23  ;;  %428 = vmatprep.subr.bf16.mxu0 %v484_v24 }
  0x1a   :  { %450 = vmatprep.subr.bf16.mxu1 %v485_v25 }
  0x1c   :  { %429 = vmatpush3.bf16.msra.mxu0 %v486_v26 }
  0x1d   :  { %451 = vmatpush3.bf16.msra.mxu1 %v487_v27  ;;  %430 = vmatprep.subr.bf16.mxu0 %v488_v28 }
  0x1e   :  { %452 = vmatprep.subr.bf16.mxu1 %v489_v29 }
  0x20   :  { %431 = vmatpush3.bf16.msra.mxu0 %v490_v30 }
  0x21   :  { %453 = vmatpush3.bf16.msra.mxu1 %v491_v31 }
  0x23   :  { %327 = vmatmul.mubr.bf16.vlgmr.msra.gmra.mrb[0].mxu0 %v380_v34 }
  0x24   :  { %367 = vmatmul.mubr.bf16.vlgmr.msra.gmra.mrb[0].mxu1 %v382_v36 }
  0xf6   :  { %v432_v38 = vpop.f32.mrb[0].mxu0 }
  0xf7   :  { %v454_v39 = vpop.f32.mrb[0].mxu1  ;;  %v433_v41 = vpop.f32.mrb[1].mxu0 }
  0xf8   :  { %v455_v42 = vpop.f32.mrb[1].mxu1  ;;  %v434_v43 = vadd.f32 %v433_v41, %v432_v38  ;;  %v435_v45 = vpop.f32.mrb[2].mxu0 }
  0xf9   :  { %v456_v44 = vadd.f32 %v455_v42, %v454_v39  ;;  %v457_v46 = vpop.f32.mrb[2].mxu1  ;;  %v436_v47 = vpop.f32.mrb[3].mxu0 }
  0xfa   :  { %v458_v48 = vpop.f32.mrb[3].mxu1  ;;  %v329_v49 = vadd.f32 %v434_v43, %v379_v40 }
  0xfc   :  { %v369_v50 = vadd.f32 %v456_v44, %v329_v49 }
  0xfe   :  { %374 = vst [vmem:[%s627_s3] sm:$0xff] %v369_v50 }

</bundles_post_ra>
